<compile_context>
chip_gen: v6e
topology: v6e:2x2x1
jax: 0.10.0
libtpu: 0.0.40
codegen_flags: <defaults>
</compile_context>

<pallas_src>
import jax
import jax.numpy as jnp
from jax.experimental import pallas as pl
from jax.experimental.pallas import tpu as pltpu


def _relu_linear_kernel(x_ref, w_ref, o_ref):
    # x_ref: [tm, tk]   activation tile (compute dtype)
    # w_ref: [tk, tn]   pre-transposed weight tile (compute dtype)
    # o_ref: [tm, tn]   f32 output tile, used directly as the K-axis accumulator
    @pl.when(pl.program_id(2) == 0)
    def _():
        o_ref[...] = jnp.zeros_like(o_ref)

    o_ref[...] += jnp.dot(
        x_ref[...], w_ref[...], preferred_element_type=jnp.float32
    )

    @pl.when(pl.program_id(2) == pl.num_programs(2) - 1)
    def _():
        o_ref[...] = jnp.maximum(o_ref[...], 0.0)


def _round_up(x, m):
    return ((x + m - 1) // m) * m


def _cdiv(a, b):
    return -(-a // b)


def _balanced_tile(dim, tile_max, align):
    """Tile <= ~tile_max with balanced coverage of `dim` (avoids e.g. B=257 -> Mp=512)."""
    if dim <= tile_max:
        return _round_up(dim, align)
    ntiles = _cdiv(dim, tile_max)
    return _round_up(_cdiv(dim, ntiles), align)


def _vmem_limit_bytes():
    # Generation-aware scoped-VMEM budget: v5e/v6e have 128 MiB physical, v7x 64 MiB.
    try:
        cap = pltpu.get_tpu_info().vmem_capacity_bytes
    except Exception:
        cap = 64 * 1024 * 1024  # conservative (v7x-sized) fallback
    return min(int(cap * 3 // 4), 110 * 1024 * 1024)


def make_relu_perceptron(weight, *, compute_dtype=jnp.float32,
                         tm_max=512, tn_max=512, tk_max=2048):
    """Build y = relu(x @ weight.T) as a Pallas TPU kernel.

    weight: [out_features, in_features] (PyTorch nn.Linear layout). It is cast,
    transposed to [in, out] and padded ONCE here, outside the per-call hot path.
    Output dtype is float32 (matches the PyTorch module); compute_dtype may be
    bfloat16 for ~2-4x MXU throughput with f32 accumulation.
    """
    OUT, IN = weight.shape
    sublane = 16 if compute_dtype == jnp.bfloat16 else 8

    tn = _balanced_tile(OUT, tn_max, 128)   # lane dim of output/weight -> 128-multiple
    tk = _balanced_tile(IN, tk_max, 128)    # lane dim of x / sublane of W -> 128-multiple
    Np = _round_up(OUT, tn)
    Kp = _round_up(IN, tk)

    # One-time weight prep: [OUT, IN] -> canonical [Kp, Np] MXU feed in compute dtype.
    w_prep = weight.astype(compute_dtype).T
    if (Kp != IN) or (Np != OUT):
        w_prep = jnp.pad(w_prep, ((0, Kp - IN), (0, Np - OUT)))
    w_prep = jax.device_put(w_prep)

    vmem_limit = _vmem_limit_bytes()

    @jax.jit
    def forward(x):
        B, IN_x = x.shape
        assert IN_x == IN, "in_features mismatch"

        tm = _balanced_tile(B, tm_max, sublane)
        Mp = _round_up(B, tm)

        xp = x.astype(compute_dtype)
        if (Mp != B) or (Kp != IN):
            xp = jnp.pad(xp, ((0, Mp - B), (0, Kp - IN)))  # zeros don't affect the dot

        grid = (Mp // tm, Np // tn, Kp // tk)

        out_p = pl.pallas_call(
            _relu_linear_kernel,
            out_shape=jax.ShapeDtypeStruct((Mp, Np), jnp.float32),
            grid_spec=pltpu.PrefetchScalarGridSpec(
                num_scalar_prefetch=0,
                grid=grid,
                in_specs=[
                    pl.BlockSpec((tm, tk), lambda i, j, k: (i, k)),  # x tile
                    # TODO(synk): on v5e, sweep pipeline_mode=pl.Buffered(3) here if
                    # the weight-stream DMA shows up as exposed latency.
                    pl.BlockSpec((tk, tn), lambda i, j, k: (k, j)),  # W tile [K, N]
                ],
                out_specs=pl.BlockSpec((tm, tn), lambda i, j, k: (i, j)),
            ),
            compiler_params=pltpu.CompilerParams(
                # M/N tiles are independent -> parallel (lets v7x shard across its
                # two TensorCores); K is the reduction -> arbitrary, kept last.
                # TODO(synk): confirm via xprof that v7x actually splits M/N across
                # both cores; otherwise switch to an explicit CORE_PARALLEL axis.
                dimension_semantics=("parallel", "parallel", "arbitrary"),
                vmem_limit_bytes=vmem_limit,
            ),
        )(xp, w_prep)

        if (Mp != B) or (Np != OUT):
            out_p = out_p[:B, :OUT]
        return out_p

    return forward


if __name__ == "__main__":
    key = jax.random.PRNGKey(0)
    kx, kw, kx2, kw2 = jax.random.split(key, 4)

    # --- Case 1: module-sized shapes, f32 compute (exact PyTorch numerics) ---
    batch, in_layers, out_layers = 8, 32, 16
    x = jax.random.normal(kx, (batch, in_layers), dtype=jnp.float32)
    bound = 1.0 / jnp.sqrt(in_layers)
    weight = jax.random.uniform(
        kw, (out_layers, in_layers), dtype=jnp.float32, minval=-bound, maxval=bound
    )
    fwd = make_relu_perceptron(weight)
    out = jax.block_until_ready(fwd(x))
    ref = jnp.maximum(x @ weight.T, 0.0)
    assert out.shape == ref.shape
    assert jnp.allclose(out, ref, atol=1e-5, rtol=1e-5)

    # --- Case 2: multi-tile grid (exercises K accumulation, padding, balanced tiles) ---
    B2, IN2, OUT2 = 160, 384, 200
    x2 = jax.random.normal(kx2, (B2, IN2), dtype=jnp.float32)
    w2 = jax.random.normal(kw2, (OUT2, IN2), dtype=jnp.float32) / jnp.sqrt(IN2)
    fwd2 = make_relu_perceptron(w2, tm_max=128, tn_max=128, tk_max=128)
    out2 = jax.block_until_ready(fwd2(x2))
    ref2 = jnp.maximum(x2 @ w2.T, 0.0)
    assert out2.shape == ref2.shape
    assert jnp.allclose(out2, ref2, atol=1e-2, rtol=1e-2)

    # --- Case 3: bf16 compute path (f32 accumulation, f32 output) ---
    fwd_bf16 = make_relu_perceptron(weight, compute_dtype=jnp.bfloat16)
    out_bf = jax.block_until_ready(fwd_bf16(x))
    assert jnp.allclose(out_bf, ref, atol=3e-2, rtol=3e-2)

    print("KERNEL_OK")
</pallas_src>

<mosaic_0001>
module attributes {stable_mosaic.version = 11 : i64} {
  func.func @_relu_linear_kernel(%arg0: i32, %arg1: i32, %arg2: i32, %arg3: memref<8x128xf32, #tpu.memory_space<vmem>>, %arg4: memref<128x128xf32, #tpu.memory_space<vmem>>, %arg5: memref<8x128xf32, #tpu.memory_space<vmem>>) attributes {dimension_semantics = [#tpu.dimension_semantics<parallel>, #tpu.dimension_semantics<parallel>, #tpu.dimension_semantics<arbitrary>], iteration_bounds = array<i64: 1, 1, 1>, scalar_prefetch = 0 : i64, scratch_operands = 0 : i64, tpu.core_type = #tpu.core_type<tc>, window_params = [{transform_indices = @transform_0, window_bounds = array<i64: 8, 128>}, {transform_indices = @transform_1, window_bounds = array<i64: 128, 128>}, {transform_indices = @transform_2, window_bounds = array<i64: 8, 128>}]} {
    %c0_i32 = arith.constant 0 : i32
    %0 = arith.cmpi eq, %arg2, %c0_i32 : i32
    %1 = arith.extui %0 : i1 to i32
    %c0_i32_0 = arith.constant 0 : i32
    %2 = arith.cmpi ne, %1, %c0_i32_0 : i32
    scf.if %2 {
      %cst_10 = arith.constant 0.000000e+00 : f32
      %12 = vector.broadcast %cst_10 : f32 to vector<8x128xf32>
      %c0_11 = arith.constant 0 : index
      %c0_12 = arith.constant 0 : index
      %13 = vector.load %arg5[%c0_11, %c0_12] : memref<8x128xf32, #tpu.memory_space<vmem>>, vector<8x128xf32>
      tpu.vector_store %arg5[%c0_11, %c0_12], %12 {strides = array<i32>} : memref<8x128xf32, #tpu.memory_space<vmem>>, vector<8x128xf32>,
    } else {
    }
    %c0 = arith.constant 0 : index
    %c0_1 = arith.constant 0 : index
    %3 = vector.load %arg5[%c0, %c0_1] : memref<8x128xf32, #tpu.memory_space<vmem>>, vector<8x128xf32>
    %c0_2 = arith.constant 0 : index
    %c0_3 = arith.constant 0 : index
    %4 = vector.load %arg3[%c0_2, %c0_3] : memref<8x128xf32, #tpu.memory_space<vmem>>, vector<8x128xf32>
    %c0_4 = arith.constant 0 : index
    %c0_5 = arith.constant 0 : index
    %5 = vector.load %arg4[%c0_4, %c0_5] : memref<128x128xf32, #tpu.memory_space<vmem>>, vector<128x128xf32>
    %cst = arith.constant dense<0.000000e+00> : vector<8x128xf32>
    %6 = tpu.matmul %4, %5, %cst {dimension_numbers = #tpu.dot_dimension_numbers<[1], [0], [0], [1], [0, 0, 1, 1], [], []>} : vector<8x128xf32>, vector<128x128xf32>, vector<8x128xf32> -> vector<8x128xf32>
    %7 = arith.addf %3, %6 : vector<8x128xf32>
    %c0_6 = arith.constant 0 : index
    %c0_7 = arith.constant 0 : index
    %8 = vector.load %arg5[%c0_6, %c0_7] : memref<8x128xf32, #tpu.memory_space<vmem>>, vector<8x128xf32>
    tpu.vector_store %arg5[%c0_6, %c0_7], %7 {strides = array<i32>} : memref<8x128xf32, #tpu.memory_space<vmem>>, vector<8x128xf32>,
    %c0_i32_8 = arith.constant 0 : i32
    %9 = arith.cmpi eq, %arg2, %c0_i32_8 : i32
    %10 = arith.extui %9 : i1 to i32
    %c0_i32_9 = arith.constant 0 : i32
    %11 = arith.cmpi ne, %10, %c0_i32_9 : i32
    scf.if %11 {
      %c0_10 = arith.constant 0 : index
      %c0_11 = arith.constant 0 : index
      %12 = vector.load %arg5[%c0_10, %c0_11] : memref<8x128xf32, #tpu.memory_space<vmem>>, vector<8x128xf32>
      %cst_12 = arith.constant 0.000000e+00 : f32
      %13 = vector.broadcast %cst_12 : f32 to vector<8x128xf32>
      %14 = arith.maximumf %12, %13 : vector<8x128xf32>
      %c0_13 = arith.constant 0 : index
      %c0_14 = arith.constant 0 : index
      %15 = vector.load %arg5[%c0_13, %c0_14] : memref<8x128xf32, #tpu.memory_space<vmem>>, vector<8x128xf32>
      tpu.vector_store %arg5[%c0_13, %c0_14], %14 {strides = array<i32>} : memref<8x128xf32, #tpu.memory_space<vmem>>, vector<8x128xf32>,
    } else {
    }
    return
  }
  func.func @transform_0(%arg0: i32, %arg1: i32, %arg2: i32) -> (i32, i32) {
    %c0_i32 = arith.constant 0 : i32
    return %arg0, %arg2 : i32, i32
  }
  func.func @transform_1(%arg0: i32, %arg1: i32, %arg2: i32) -> (i32, i32) {
    %c0_i32 = arith.constant 0 : i32
    return %arg2, %arg1 : i32, i32
  }
  func.func @transform_2(%arg0: i32, %arg1: i32, %arg2: i32) -> (i32, i32) {
    %c0_i32 = arith.constant 0 : i32
    return %arg0, %arg1 : i32, i32
  }
}

</mosaic_0001>

<bundles_post_ra>
// kernel: forward.1
= control target key start
LH: loop header
LB: loop body
LE: loop exit
PB: predicated region body
PF: predicated region fallthrough
CT: control target
= control target key end

     0   :  { %7 = vsyncpa [#allocation3], 0  ;;  %s274_s0 = inlined_call_operand.vmem [shape: f32[8,128], index: 0, kind: input, shape index: {}]   ;;  %s275_s1 = inlined_call_operand.hbm [shape: f32[128,128], index: 1, kind: input, shape index: {}]   ;;  %s276_s2 = inlined_call_operand.hbm [shape: f32[8,128], index: 2, kind: output, shape index: {}]  }
   0x1   :  { %8 = vsyncpa [#allocation4], 0  ;;  %s244_s9 = smov [#allocation2]  }
   0x2   :  { %s16_s10 = sshll.u32 %s244_s9, 4  ;;  %s17_s10 = int_to_ptr.vmem [resolvable:$true] %s16_s10 }
   0x3   :  { %s208_s11 = scalar_lea.vmem %s17_s10, 2048  ;;  %p213_p1 = scmp.lt.s32.totalorder %s17_s10, %s17_s10 }
   0x4   :  { %p209_p0 = scmp.ne.s32.totalorder %s17_s10, %s208_s11  ;;  %p214_p2 = scmp.lt.s32.totalorder %s208_s11, %s208_s11 }
   0x6   :  { %p215_p3 = por %p214_p2, %p213_p1 }
   0x8   :  { %p216_p4 = pnand %p215_p3, %p209_p0 }
   0xa   :  { %219 = shalt.err (!%p216_p4)
}
   0xb   :  { %s245_s12 = smov 128   ;;  %s246_s13 = smov 8  }
   0xc   :  { %22 = dma.hbm_to_vmem [thread:$0]  %s275_s1, 2048, %s17_s10, [#allocation3], %s245_s12, %s245_s12, %s246_s13  }
   0xd   :  { %240 = dma.done.wait [#allocation3], 2048  }
   0xe   :  { %241 = vsyncadd [#allocation3], 4294965248  ;;  %v247_v0 = vmov 0.0   ;;  %vm248_vm0 = vmmov 0   ;;  %v48_v1 = vld [vmem:[#allocation2 + $0x78] sm:$0xff]  ;;  %v47_v2 = vld [vmem:[#allocation2 + $0x70] sm:$0xff] }
   0xf   :  { %159 = vmatprep.subr.mxu0 %v247_v0  ;;  %191 = vmatprep.mubr.msk.f32.mxu0 %vm248_vm0, %v247_v0  ;;  %v46_v3 = vld [vmem:[#allocation2 + $0x68] sm:$0xff]  ;;  %v45_v4 = vld [vmem:[#allocation2 + $0x60] sm:$0xff]  ;;  %v44_v5 = vld [vmem:[#allocation2 + $0x58] sm:$0xff]  ;;  %s249_s17 = smov [#allocation5]  }
  0x10   :  { %160 = vmatpush3.msra.mxu0 %v48_v1  ;;  %v43_v6 = vld [vmem:[#allocation2 + $0x50] sm:$0xff]  ;;  %v42_v7 = vld [vmem:[#allocation2 + $0x48] sm:$0xff]  ;;  %v41_v8 = vld [vmem:[#allocation2 + $0x40] sm:$0xff]  ;;  %s133_s18 = sshll.u32 %s249_s17, 4  ;;  %s134_s18 = int_to_ptr.vmem [resolvable:$true] %s133_s18 }
  0x11   :  { %161 = vmatprep.subr.mxu0 %v247_v0  ;;  %v40_v9 = vld [vmem:[#allocation2 + $0x38] sm:$0xff]  ;;  %v39_v10 = vld [vmem:[#allocation2 + $0x30] sm:$0xff]  ;;  %v38_v11 = vld [vmem:[#allocation2 + $0x28] sm:$0xff]  ;;  %s220_s19 = scalar_lea.vmem %s134_s18, 128  ;;  %p225_p6 = scmp.lt.s32.totalorder %s134_s18, %s134_s18 }
  0x12   :  { %162 = vmatpush3.msra.mxu0 %v47_v2  ;;  %v37_v12 = vld [vmem:[#allocation2 + $0x20] sm:$0xff]  ;;  %v36_v13 = vld [vmem:[#allocation2 + $0x18] sm:$0xff]  ;;  %v35_v14 = vld [vmem:[#allocation2 + $0x10] sm:$0xff]  ;;  %p221_p5 = scmp.ne.s32.totalorder %s134_s18, %s220_s19  ;;  %p226_p7 = scmp.lt.s32.totalorder %s220_s19, %s220_s19 }
  0x13   :  { %163 = vmatprep.subr.mxu0 %v247_v0  ;;  %v34_v15 = vld [vmem:[#allocation2 + $0x8] sm:$0xff]  ;;  %v33_v16 = vld [vmem:[#allocation2] sm:$0xff] }
  0x14   :  { %164 = vmatpush3.msra.mxu0 %v46_v3  ;;  %v32_v17 = vld [vmem:[%s274_s0] sm:$0xff]  ;;  %p227_p8 = por %p226_p7, %p225_p6 }
  0x15   :  { %165 = vmatprep.subr.mxu0 %v247_v0 }
  0x16   :  { %166 = vmatpush3.msra.mxu0 %v45_v4  ;;  %p228_p9 = pnand %p227_p8, %p221_p5 }
  0x17   :  { %167 = vmatprep.subr.mxu0 %v247_v0 }
  0x18   :  { %168 = vmatpush3.msra.mxu0 %v44_v5 }
  0x19   :  { %169 = vmatprep.subr.mxu0 %v247_v0 }
  0x1a   :  { %170 = vmatpush3.msra.mxu0 %v43_v6 }
  0x1b   :  { %171 = vmatprep.subr.mxu0 %v247_v0 }
  0x1c   :  { %172 = vmatpush3.msra.mxu0 %v42_v7 }
  0x1d   :  { %173 = vmatprep.subr.mxu0 %v247_v0 }
  0x1e   :  { %174 = vmatpush3.msra.mxu0 %v41_v8 }
  0x1f   :  { %175 = vmatprep.subr.mxu0 %v247_v0 }
  0x20   :  { %176 = vmatpush3.msra.mxu0 %v40_v9 }
  0x21   :  { %177 = vmatprep.subr.mxu0 %v247_v0 }
  0x22   :  { %178 = vmatpush3.msra.mxu0 %v39_v10 }
  0x23   :  { %179 = vmatprep.subr.mxu0 %v247_v0 }
  0x24   :  { %180 = vmatpush3.msra.mxu0 %v38_v11 }
  0x25   :  { %181 = vmatprep.subr.mxu0 %v247_v0 }
  0x26   :  { %182 = vmatpush3.msra.mxu0 %v37_v12 }
  0x27   :  { %183 = vmatprep.subr.mxu0 %v247_v0 }
  0x28   :  { %184 = vmatpush3.msra.mxu0 %v36_v13 }
  0x29   :  { %185 = vmatprep.subr.mxu0 %v247_v0 }
  0x2a   :  { %186 = vmatpush3.msra.mxu0 %v35_v14 }
  0x2b   :  { %187 = vmatprep.subr.mxu0 %v247_v0 }
  0x2c   :  { %188 = vmatpush3.msra.mxu0 %v34_v15 }
  0x2d   :  { %189 = vmatprep.subr.mxu0 %v247_v0 }
  0x2e   :  { %190 = vmatpush3.msra.mxu0 %v33_v16 }
  0x2f   :  { %192 = vmatmul.mubr.f32.vlgmr.msra.gmra.mxu0 %v32_v17 }
  0xef   :  { %v115_v18 = vpop.f32.mrf.mxu0 }
  0xf0   :  { %v125_v20 = vmax.f32 %v115_v18, 0.0 }
  0xf1   :  { %v193_v19 = vpop.f32.mrf.mxu0 }
  0xf2   :  { %126 = vst [vmem:[#allocation5] sm:$0xff] %v125_v20 }
  0xf3   :  { %231 = shalt.err (!%p228_p9)
}
  0xf4   :  { %136 = dma.vmem_to_hbm [thread:$0]  %s134_s18, 128, %s276_s2, [#allocation4]  }
  0xf5   :  { %242 = dma.done.wait [#allocation4], 128  }
  0xf6   :  { %243 = vsyncadd [#allocation4], 4294967168 }
  0xf7   :  { %140 = vsyncpa [#allocation3], 1 }
  0xf8   :  { %141 = vsyncpa [#allocation4], 1 }

</bundles_post_ra>
